<compile_context>
chip_gen: v6e
topology: v6e:2x2x1
jax: 0.10.0
libtpu: 0.0.40
codegen_flags: <defaults>
</compile_context>

<pallas_src>
import functools

import jax
import jax.numpy as jnp
from jax.experimental import pallas as pl
from jax.experimental.pallas import tpu as pltpu


def _budget_kernel(g_ref, out_ref, acc_ref, *, inv_batch, const,
                   inv_max_const, target_ratio, gamma_eff):
    step = pl.program_id(0) * pl.num_programs(1) + pl.program_id(1)
    last = pl.num_programs(0) * pl.num_programs(1) - 1

    @pl.when(step == 0)
    def _():
        acc_ref[0] = jnp.float32(0.0)

    # Cast on the VMEM tile: keeps HBM traffic at the native dtype (2x saving
    # for bf16 inputs) and guarantees f32 VPU math (v5e has no bf16 VPU path).
    g = g_ref[...].astype(jnp.float32)              # (tile_b, 2, tile_hw)
    w = g[:, 0, :] + 4.0 * g[:, 1, :]               # weighted dual-grain gate
    acc_ref[0] += jnp.sum(w)

    @pl.when(step == last)
    def _():
        beta = acc_ref[0] * inv_batch - const
        budget_ratio = beta * inv_max_const
        diff = budget_ratio - target_ratio
        # nn.MSELoss on two scalars == diff**2; the calculate_all branch is the
        # same diff negated, so it folds into a x2 multiplier (gamma_eff).
        out_ref[0, 0] = gamma_eff * diff * diff


def _largest_divisor_leq(n, cap):
    cap = max(1, min(n, cap))
    for d in range(cap, 0, -1):
        if n % d == 0:
            return d
    return 1


def budget_constraint_ratio_mse_dualgrain(gate,
                                          target_ratio=0.0,
                                          gamma=1.0,
                                          min_grain_size=8,
                                          max_grain_size=16,
                                          calculate_all=True):
    """Pallas implementation of BudgetConstraint_RatioMSE_DualGrain.forward."""
    B, C, H, W = gate.shape
    assert C == 2, "gate must have 2 channels (dual-grain gate)"
    HW = H * W

    # Free reshape on contiguous NCHW: one input, one HBM stream.
    g = gate.reshape(B, 2, HW)

    elem = jnp.dtype(gate.dtype).itemsize
    TARGET = 1 << 20  # ~1 MiB per input tile (x2 double-buffer) -> safe on v7x too

    # Spatial chunking only when a single batch row would blow the tile budget
    # and HW can be split into 128-lane-multiple chunks; otherwise keep full HW
    # (full-dim blocks are always legal regardless of the (8,128) rule).
    if 2 * HW * elem > TARGET and HW % 128 == 0:
        units = HW // 128
        cap_units = max(1, TARGET // (2 * 128 * elem))
        tile_hw = _largest_divisor_leq(units, cap_units) * 128
    else:
        tile_hw = HW
    tile_b = _largest_divisor_leq(B, max(1, TARGET // (2 * tile_hw * elem)))

    grid = (B // tile_b, HW // tile_hw)
    tile_bytes = tile_b * 2 * tile_hw * elem

    const = float(min_grain_size ** 2)
    max_const = float(max_grain_size ** 2 - min_grain_size ** 2)
    gamma_eff = float(gamma) * (2.0 if calculate_all else 1.0)

    kernel = functools.partial(
        _budget_kernel,
        inv_batch=1.0 / float(B),
        const=const,
        inv_max_const=1.0 / max_const,
        target_ratio=float(target_ratio),
        gamma_eff=gamma_eff,
    )

    out = pl.pallas_call(
        kernel,
        out_shape=jax.ShapeDtypeStruct((1, 1), jnp.float32),
        grid=grid,
        in_specs=[pl.BlockSpec((tile_b, 2, tile_hw), lambda i, j: (i, 0, j))],
        out_specs=pl.BlockSpec((1, 1), lambda i, j: (0, 0),
                               memory_space=pltpu.SMEM),
        scratch_shapes=[pltpu.SMEM((1,), jnp.float32)],
        compiler_params=pltpu.CompilerParams(
            dimension_semantics=("arbitrary", "arbitrary"),
            vmem_limit_bytes=min(max(4 * tile_bytes + (1 << 20), 4 << 20),
                                 32 << 20),
        ),
        cost_estimate=pl.CostEstimate(
            flops=3 * B * HW,
            transcendentals=0,
            bytes_accessed=B * 2 * HW * elem + 4,
        ),
    )(g)

    return out[0, 0]


def _reference(gate, target_ratio=0.0, gamma=1.0, min_grain_size=8,
               max_grain_size=16, calculate_all=True):
    gate = gate.astype(jnp.float32)
    const = min_grain_size ** 2
    max_const = max_grain_size ** 2 - const
    beta = (gate[:, 0] + 4.0 * gate[:, 1]).sum() / gate.shape[0] - const
    budget_ratio = beta / max_const
    tr = jnp.float32(target_ratio)
    loss = gamma * (budget_ratio - tr) ** 2
    if calculate_all:
        loss = loss + gamma * ((1.0 - budget_ratio) - (1.0 - tr)) ** 2
    return loss


if __name__ == "__main__":
    key = jax.random.PRNGKey(0)
    B, C, H, W = 2, 2, 8, 8  # min_grain_size=8 -> 8x8 gate map, 2 grain channels
    gate = jax.random.uniform(key, (B, C, H, W), dtype=jnp.float32)

    loss = budget_constraint_ratio_mse_dualgrain(
        gate, target_ratio=0.0, gamma=1.0,
        min_grain_size=8, max_grain_size=16, calculate_all=True)
    loss = jax.block_until_ready(loss)

    ref = _reference(gate)
    assert jnp.allclose(loss, ref, rtol=1e-5, atol=1e-5), (loss, ref)

    print("KERNEL_OK")
</pallas_src>

<mosaic_0001>
module attributes {stable_mosaic.version = 11 : i64} {
  func.func @_budget_kernel(%arg0: i32, %arg1: i32, %arg2: memref<2x2x64xf32, #tpu.memory_space<vmem>>, %arg3: memref<1x1xf32, #tpu.memory_space<smem>>, %arg4: memref<1xf32, #tpu.memory_space<smem>>) attributes {dimension_semantics = [#tpu.dimension_semantics<arbitrary>, #tpu.dimension_semantics<arbitrary>], iteration_bounds = array<i64: 1, 1>, scalar_prefetch = 0 : i64, scratch_operands = 1 : i64, tpu.core_type = #tpu.core_type<tc>, window_params = [{transform_indices = @transform_0, window_bounds = array<i64: 2, 2, 64>}, {transform_indices = @transform_1, window_bounds = array<i64: 1, 1>}]} {
    %c1_i32 = arith.constant 1 : i32
    %0 = arith.muli %arg0, %c1_i32 : i32
    %1 = arith.addi %0, %arg1 : i32
    %c0_i32 = arith.constant 0 : i32
    %2 = arith.cmpi eq, %1, %c0_i32 : i32
    %3 = arith.extui %2 : i1 to i32
    %c0_i32_0 = arith.constant 0 : i32
    %4 = arith.cmpi ne, %3, %c0_i32_0 : i32
    scf.if %4 {
      %cst_8 = arith.constant 0.000000e+00 : f32
      %c0_9 = arith.constant 0 : index
      %23 = memref.load %arg4[%c0_9] : memref<1xf32, #tpu.memory_space<smem>>
      memref.store %cst_8, %arg4[%c0_9] : memref<1xf32, #tpu.memory_space<smem>>
    } else {
    }
    %c0 = arith.constant 0 : index
    %c0_1 = arith.constant 0 : index
    %c0_2 = arith.constant 0 : index
    %5 = vector.load %arg2[%c0, %c0_1, %c0_2] : memref<2x2x64xf32, #tpu.memory_space<vmem>>, vector<2x2x64xf32>
    %6 = vector.extract_strided_slice %5 {offsets = [0, 0, 0], sizes = [2, 1, 64], strides = [1, 1, 1]} : vector<2x2x64xf32> to vector<2x1x64xf32>
    %7 = vector.shape_cast %6 : vector<2x1x64xf32> to vector<2x64xf32>
    %8 = vector.extract_strided_slice %5 {offsets = [0, 1, 0], sizes = [2, 1, 64], strides = [1, 1, 1]} : vector<2x2x64xf32> to vector<2x1x64xf32>
    %9 = vector.shape_cast %8 : vector<2x1x64xf32> to vector<2x64xf32>
    %cst = arith.constant 4.000000e+00 : f32
    %10 = vector.broadcast %cst : f32 to vector<2x64xf32>
    %11 = arith.mulf %10, %9 : vector<2x64xf32>
    %12 = arith.addf %7, %11 : vector<2x64xf32>
    %c0_3 = arith.constant 0 : index
    %13 = memref.load %arg4[%c0_3] : memref<1xf32, #tpu.memory_space<smem>>
    %14 = vector.shape_cast %12 : vector<2x64xf32> to vector<1x2x64xf32>
    %cst_4 = arith.constant dense<0.000000e+00> : vector<1xf32>
    %15 = vector.multi_reduction <add>, %14, %cst_4 [1, 2] : vector<1x2x64xf32> to vector<1xf32>
    %16 = vector.shape_cast %15 : vector<1xf32> to vector<1x1x1xf32>
    %17 = vector.extract %16[0, 0, 0] : f32 from vector<1x1x1xf32>
    %18 = arith.addf %13, %17 : f32
    %c0_5 = arith.constant 0 : index
    %19 = memref.load %arg4[%c0_5] : memref<1xf32, #tpu.memory_space<smem>>
    memref.store %18, %arg4[%c0_5] : memref<1xf32, #tpu.memory_space<smem>>
    %c0_i32_6 = arith.constant 0 : i32
    %20 = arith.cmpi eq, %1, %c0_i32_6 : i32
    %21 = arith.extui %20 : i1 to i32
    %c0_i32_7 = arith.constant 0 : i32
    %22 = arith.cmpi ne, %21, %c0_i32_7 : i32
    scf.if %22 {
      %c0_8 = arith.constant 0 : index
      %23 = memref.load %arg4[%c0_8] : memref<1xf32, #tpu.memory_space<smem>>
      %cst_9 = arith.constant 5.000000e-01 : f32
      %24 = arith.mulf %23, %cst_9 : f32
      %cst_10 = arith.constant 6.400000e+01 : f32
      %25 = arith.subf %24, %cst_10 : f32
      %cst_11 = arith.constant 0.00520833349 : f32
      %26 = arith.mulf %25, %cst_11 : f32
      %cst_12 = arith.constant 0.000000e+00 : f32
      %27 = arith.subf %26, %cst_12 : f32
      %cst_13 = arith.constant 2.000000e+00 : f32
      %28 = arith.mulf %cst_13, %27 : f32
      %29 = arith.mulf %28, %27 : f32
      %c0_14 = arith.constant 0 : index
      %c0_15 = arith.constant 0 : index
      %30 = memref.load %arg3[%c0_14, %c0_15] : memref<1x1xf32, #tpu.memory_space<smem>>
      memref.store %29, %arg3[%c0_14, %c0_15] : memref<1x1xf32, #tpu.memory_space<smem>>
    } else {
    }
    return
  }
  func.func @transform_0(%arg0: i32, %arg1: i32) -> (i32, i32, i32) {
    %c0_i32 = arith.constant 0 : i32
    %c0_i32_0 = arith.constant 0 : i32
    return %arg0, %c0_i32, %arg1 : i32, i32, i32
  }
  func.func @transform_1(%arg0: i32, %arg1: i32) -> (i32, i32) {
    %c0_i32 = arith.constant 0 : i32
    %c0_i32_0 = arith.constant 0 : i32
    %c0_i32_1 = arith.constant 0 : i32
    return %c0_i32, %c0_i32_0 : i32, i32
  }
}

</mosaic_0001>

<bundles_post_ra>
// kernel: tpu_custom_call.1
= control target key start
LH: loop header
LB: loop body
LE: loop exit
PB: predicated region body
PF: predicated region fallthrough
CT: control target
= control target key end

     0   :  { %6 = vsyncpa [#allocation4], 0  ;;  %s147_s0 = inlined_call_operand.hbm [shape: f32[2,2,64], index: 0, kind: input, shape index: {}]   ;;  %s148_s1 = inlined_call_operand.hbm [shape: f32[1,1], index: 1, kind: output, shape index: {}]  }
   0x1   :  { %7 = vsyncpa [#allocation5], 0  ;;  %s127_s6 = smov [#allocation3]  }
   0x2   :  { %s13_s7 = sshll.u32 %s127_s6, 4  ;;  %s14_s7 = int_to_ptr.vmem [resolvable:$true] %s13_s7 }
   0x3   :  { %s103_s8 = scalar_lea.vmem %s14_s7, 64  ;;  %p108_p1 = scmp.lt.s32.totalorder %s14_s7, %s14_s7 }
   0x4   :  { %p104_p0 = scmp.ne.s32.totalorder %s14_s7, %s103_s8  ;;  %p109_p2 = scmp.lt.s32.totalorder %s103_s8, %s103_s8 }
   0x6   :  { %p110_p3 = por %p109_p2, %p108_p1 }
   0x8   :  { %p111_p4 = pnand %p110_p3, %p104_p0 }
   0xa   :  { %114 = shalt.err (!%p111_p4)
}
   0xb   :  { %s128_s9 = smov 32   ;;  %s129_s10 = smov 2  }
   0xc   :  { %19 = dma.hbm_to_vmem [thread:$0]  %s147_s0, 64, %s14_s7, [#allocation4], %s128_s9, %s128_s9, %s129_s10  }
   0xd   :  { %123 = dma.done.wait [#allocation4], 64  }
   0xe   :  { %124 = vsyncadd [#allocation4], 4294967232  ;;  %v30_v0 = vld [vmem:[#allocation3] sm:$0x3]  ;;  %v31_v1 = vld [vmem:[#allocation3 + $0x2] sm:$0x3] }
   0xf   :  { %v32_v2 = vmul.f32 4.0, %v30_v0  ;;  %v33_v3 = vmul.f32 4.0, %v31_v1  ;;  %vm46_vm0 = vcmask 1041409   ;;  %vm49_vm1 = vcmask 517120   ;;  %s130_s18 = smov [#allocation6]  }
  0x11   :  { %v36_v4 = vrot.slane %v32_v2, 1  ;;  %v37_v5 = vrot.slane %v33_v3, 1 }
  0x13   :  { %v40_v6 = vadd.f32 %v36_v4, %v30_v0  ;;  %v41_v7 = vadd.f32 %v37_v5, %v31_v1 }
  0x15   :  { %v45_v8 = vrot.slane %v41_v7, 7 }
  0x17   :  { %v47_v9 = vsel %vm46_vm0, %v45_v8, %v40_v6 }
  0x18   :  { %v50_v10 = vsel %vm49_vm1, %v47_v9, 0.0 }
  0x19   :  { %51 = vadd.xlane.f32.xlu0 %v50_v10 }
  0xa2   :  { %v52_v11 = vpop.xlane.xlu0 %51 }
  0xa3   :  { %v53_v12 = vrot.slane %v52_v11, 4 }
  0xa5   :  { %v54_v13 = vadd.f32 %v53_v12, %v52_v11 }
  0xa7   :  { %v55_v14 = vrot.slane %v54_v13, 2 }
  0xa9   :  { %v56_v15 = vadd.f32 %v55_v14, %v54_v13 }
  0xab   :  { %v57_v16 = vrot.slane %v56_v15, 1 }
  0xad   :  { %v58_v17 = vadd.f32 %v57_v16, %v56_v15 }
  0xaf   :  { %89 = vpush %v58_v17 }
  0xe0   :  { %s90_s0 = spop %89 }
  0xe1   :  { %s67_s13 = smul.f32 0.5, %s90_s0 }
  0xe3   :  { %s88_s14 = sadd.f32 -64.0, %s67_s13 }
  0xe5   :  { %s69_s15 = smul.f32 0.0052083335, %s88_s14 }
  0xe7   :  { %s70_s16 = smul.f32 2.0, %s69_s15 }
  0xe9   :  { %s71_s17 = smul.f32 %s70_s16, %s69_s15 }
  0xeb   :  { %73 = sst [smem:[#allocation6]] %s71_s17 }
  0xec   :  { %81 = dma.smem_to_hbm %s130_s18, 16, %s148_s1, [#allocation5]  }
  0xed   :  { %125 = dma.done.wait [#allocation5], 16  }
  0xee   :  { %126 = vsyncadd [#allocation5], 4294967280 }
  0xef   :  { %85 = sfence }
  0xf0   :  { %86 = vsyncpa [#allocation4], 1 }
  0xf1   :  { %87 = vsyncpa [#allocation5], 1 }

</bundles_post_ra>
